<compile_context>
chip_gen: v7x
topology: tpu7x:2x2x1
jax: 0.10.0
libtpu: 0.0.40
codegen_flags: <defaults>
</compile_context>

<pallas_src>
import jax
import jax.numpy as jnp
from jax import lax
from jax.experimental import pallas as pl
from jax.experimental.pallas import tpu as pltpu

# ----------------------- model hyper-parameters (small) -----------------------
VOCAB = 32        # vocab_size
H = 32            # hidden_units
B = 2             # batch
L = 8             # sequence length
F = 3             # conv filter height f
NC = 5            # conv out channels nc
S = 1             # stride (padding p = 0)
T = (L - F) // S + 1          # conv output length
IN_DIM = T                    # MaxPool1d kernel size; must equal T (global max)

W_SLAB = F * NC               # packed-slab width (15)
SLAB_ROWS = H + 8             # 32 rows of conv weights + 8-row aligned tail

assert IN_DIM == T, "MaxPool1d kernel size must equal the conv output length"
assert 3 + B <= 8, "param/label tail must fit in the 8-row slab tail"
assert B + 1 <= 8, "logits + loss must fit in the 8-row output block"


# ------------------------------- Pallas kernel --------------------------------
def cnn_kernel(tok_ref, embed_ref, slab_ref, out_ref):
    # ---- 1) Embedding gather as a one-hot MXU matmul (exact row selection) ----
    tok = tok_ref[...]                                              # (B*L, 1) int32
    vocab_iota = lax.broadcasted_iota(jnp.int32, (B * L, VOCAB), 1)
    one_hot = (tok == vocab_iota).astype(jnp.float32)               # (B*L, VOCAB)
    emb = jnp.dot(one_hot, embed_ref[...],
                  preferred_element_type=jnp.float32)               # (B*L, H)

    # ---- 2) Conv2d(1, NC, (F, H)): one matmul against all F taps, then shifts --
    w_all = slab_ref[0:H, :]                                        # (H, F*NC)
    tail = slab_ref[H:H + 8, :]                                     # (8, F*NC)
    proj = jnp.dot(emb, w_all, preferred_element_type=jnp.float32)  # (B*L, F*NC)
    # Pad F-1 rows so all shifted windows are static in-bounds slices; the padded
    # rows only feed positions t >= T which are masked out before the pool.
    proj = jnp.concatenate(
        [proj, jnp.zeros((F - 1, F * NC), jnp.float32)], axis=0)    # (B*L+F-1, F*NC)
    conv = proj[0:B * L, 0:NC]
    for f in range(1, F):        # static F-1 = 2 shifted adds (tap count, not batch)
        conv = conv + proj[f:f + B * L, f * NC:(f + 1) * NC]         # (B*L, NC)

    # ---- 3) MaxPool1d(IN_DIM == T): mask invalid t, aligned reshape, one reduce -
    conv3 = conv.reshape(B, L, NC)                                  # 16 -> (2, 8): tile-aligned
    t_idx = lax.broadcasted_iota(jnp.int32, (B, L, NC), 1)
    conv3 = jnp.where(t_idx < IN_DIM, conv3, jnp.float32(-1e30))
    conv_b = tail[0:1, 0:NC]                                        # (1, NC)
    pooled = jnp.max(conv3, axis=1) + conv_b                        # (B, NC)

    # TODO(synk): nn.Dropout(p=0.2) implemented as eval-mode identity (no masking).

    # ---- 4) Linear(NC, 1) head on the VPU (mul + lane reduce), no 2nd MXU dot --
    l1_w = tail[1:2, 0:NC]                                          # (1, NC)
    l1_b = tail[2:3, 0:1]                                           # (1, 1)
    z = jnp.sum(pooled * l1_w, axis=1, keepdims=True) + l1_b        # (B, 1)

    # ---- 5) BCEWithLogitsLoss (mean), numerically stable formulation ----------
    y = tail[3:3 + B, 0:1]                                          # (B, 1) labels
    bce = jnp.maximum(z, 0.0) - z * y + jnp.log(1.0 + jnp.exp(-jnp.abs(z)))
    loss = jnp.sum(bce, axis=0, keepdims=True) * (1.0 / B)          # (1, 1)

    # ---- 6) Single lane-dense (8, 128) output block, one unmasked store -------
    #   rows 0..B-1 : logit_b (broadcast across lanes); row B : loss.
    vals = jnp.concatenate(
        [z, loss, jnp.zeros((8 - B - 1, 1), jnp.float32)], axis=0)  # (8, 1)
    out_ref[...] = jnp.broadcast_to(vals, (8, 128))


# ------------------------------ wrapper / packing ------------------------------
def _pack_param_slab(params, y):
    """One (SLAB_ROWS, F*NC) f32 slab holding every small operand (1 DMA total).

    rows 0..H-1        : [w_0 | w_1 | w_2] -> w_all[h, f*NC + c] = conv_w[f, h, c]
    row  H + 0         : conv_b   (lanes 0..NC-1)
    row  H + 1         : l1_w^T   (lanes 0..NC-1)
    row  H + 2         : l1_b     (lane 0)
    rows H+3 .. H+3+B-1: labels y (lane 0)
    """
    w_all = jnp.transpose(params["conv_w"], (1, 0, 2)).reshape(H, W_SLAB)

    def _row(v):
        v = v.astype(jnp.float32)
        return jnp.pad(v, ((0, 0), (0, W_SLAB - v.shape[1])))

    tail = jnp.concatenate(
        [
            _row(params["conv_b"]),                 # (1, W)
            _row(params["l1_w"].T),                 # (1, W)
            _row(params["l1_b"]),                   # (1, W)
            _row(y[:, None]),                       # (B, W)
            jnp.zeros((8 - 3 - B, W_SLAB), jnp.float32),
        ],
        axis=0,
    )                                               # (8, W)
    return jnp.concatenate([w_all, tail], axis=0)   # (SLAB_ROWS, W)


@jax.jit
def cnn_forward(tokens, y, params):
    """Returns (loss, logits) exactly like CNN_model.forward (eval mode)."""
    slab = _pack_param_slab(params, y)
    tok_col = tokens.reshape(B * L, 1).astype(jnp.int32)

    # Single kernel invocation (no grid, whole-array blocks => no pointless
    # double-buffering); 3 input DMAs + 1 lane-dense output DMA.
    out = pl.pallas_call(
        cnn_kernel,
        out_shape=jax.ShapeDtypeStruct((8, 128), jnp.float32),
    )(tok_col, params["embed"], slab)

    logits = out[0:B, 0]       # rows 0..B-1, lane 0
    loss = out[B, 0]           # row B, lane 0
    return loss, logits


# ------------------------------- pure-JAX reference ----------------------------
def ref_forward(tokens, y, params):
    emb = params["embed"][tokens]                                          # (B, L, H)
    patches = jnp.stack([emb[:, i:i + T, :] for i in range(F)], axis=2)    # (B,T,F,H)
    conv = jnp.einsum("btfh,fhc->btc", patches,
                      params["conv_w"]) + params["conv_b"][0]              # (B, T, NC)
    pooled = jnp.max(conv[:, :IN_DIM, :], axis=1)                          # (B, NC)
    z = pooled @ params["l1_w"] + params["l1_b"]                           # (B, 1)
    logits = z[:, 0]
    bce = jnp.mean(jnp.maximum(logits, 0.0) - logits * y
                   + jnp.log(1.0 + jnp.exp(-jnp.abs(logits))))
    return bce, logits


# ------------------------------------- main ------------------------------------
if __name__ == "__main__":
    key = jax.random.PRNGKey(0)
    k_emb, k_cw, k_cb, k_lw, k_lb, k_tok, k_y = jax.random.split(key, 7)

    params = {
        # nn.Embedding(vocab_size, hidden_units)
        "embed": jax.random.normal(k_emb, (VOCAB, H), jnp.float32),
        # nn.Conv2d(1, nc, (f, hidden_units)) weight (nc,1,f,H) stored as (f, H, nc)
        "conv_w": jax.random.normal(k_cw, (F, H, NC), jnp.float32) * 0.1,
        "conv_b": jax.random.normal(k_cb, (1, NC), jnp.float32) * 0.1,
        # nn.Linear(nc, 1) weight (1, nc) stored transposed as (nc, 1)
        "l1_w": jax.random.normal(k_lw, (NC, 1), jnp.float32) * 0.1,
        "l1_b": jax.random.normal(k_lb, (1, 1), jnp.float32) * 0.1,
    }

    tokens = jax.random.randint(k_tok, (B, L), 0, VOCAB, dtype=jnp.int32)
    y = jax.random.bernoulli(k_y, 0.5, (B,)).astype(jnp.float32)

    loss, logits = cnn_forward(tokens, y, params)
    jax.block_until_ready((loss, logits))

    loss_ref, logits_ref = ref_forward(tokens, y, params)
    assert jnp.allclose(logits, logits_ref, atol=1e-4), (logits, logits_ref)
    assert jnp.allclose(loss, loss_ref, atol=1e-4), (loss, loss_ref)

    print("KERNEL_OK")
</pallas_src>

<mosaic_0001>
module attributes {stable_mosaic.version = 11 : i64} {
  func.func @cnn_kernel(%arg0: memref<16x1xi32, #tpu.memory_space<vmem>>, %arg1: memref<32x32xf32, #tpu.memory_space<vmem>>, %arg2: memref<40x15xf32, #tpu.memory_space<vmem>>, %arg3: memref<8x128xf32, #tpu.memory_space<vmem>>) attributes {dimension_semantics = [], scalar_prefetch = 0 : i64, scratch_operands = 0 : i64, tpu.core_type = #tpu.core_type<tc>} {
    %c0 = arith.constant 0 : index
    %c0_0 = arith.constant 0 : index
    %0 = vector.load %arg0[%c0, %c0_0] : memref<16x1xi32, #tpu.memory_space<vmem>>, vector<16x1xi32>
    %1 = tpu.iota {dimensions = array<i32: 1>} : vector<16x32xi32>
    %2 = vector.broadcast %0 : vector<16x1xi32> to vector<16x32xi32>
    %3 = arith.cmpi eq, %2, %1 : vector<16x32xi32>
    %4 = arith.extui %3 : vector<16x32xi1> to vector<16x32xi32>
    %5 = arith.sitofp %4 : vector<16x32xi32> to vector<16x32xf32>
    %c0_1 = arith.constant 0 : index
    %c0_2 = arith.constant 0 : index
    %6 = vector.load %arg1[%c0_1, %c0_2] : memref<32x32xf32, #tpu.memory_space<vmem>>, vector<32x32xf32>
    %cst = arith.constant dense<0.000000e+00> : vector<16x32xf32>
    %7 = tpu.matmul %5, %6, %cst {dimension_numbers = #tpu.dot_dimension_numbers<[1], [0], [0], [1], [0, 0, 1, 1], [], []>} : vector<16x32xf32>, vector<32x32xf32>, vector<16x32xf32> -> vector<16x32xf32>
    %c0_3 = arith.constant 0 : index
    %c0_4 = arith.constant 0 : index
    %8 = vector.load %arg2[%c0_3, %c0_4] : memref<40x15xf32, #tpu.memory_space<vmem>>, vector<32x15xf32>
    %c32 = arith.constant 32 : index
    %c0_5 = arith.constant 0 : index
    %9 = vector.load %arg2[%c32, %c0_5] : memref<40x15xf32, #tpu.memory_space<vmem>>, vector<8x15xf32>
    %cst_6 = arith.constant dense<0.000000e+00> : vector<16x15xf32>
    %10 = tpu.matmul %7, %8, %cst_6 {dimension_numbers = #tpu.dot_dimension_numbers<[1], [0], [0], [1], [0, 0, 1, 1], [], []>} : vector<16x32xf32>, vector<32x15xf32>, vector<16x15xf32> -> vector<16x15xf32>
    %cst_7 = arith.constant 0.000000e+00 : f32
    %11 = vector.broadcast %cst_7 : f32 to vector<2x15xf32>
    %12 = tpu.concatenate %10, %11 in 0 : vector<16x15xf32>, vector<2x15xf32> -> vector<18x15xf32>
    %13 = vector.extract_strided_slice %12 {offsets = [0, 0], sizes = [16, 5], strides = [1, 1]} : vector<18x15xf32> to vector<16x5xf32>
    %14 = vector.extract_strided_slice %12 {offsets = [1, 5], sizes = [16, 5], strides = [1, 1]} : vector<18x15xf32> to vector<16x5xf32>
    %15 = arith.addf %13, %14 : vector<16x5xf32>
    %16 = vector.extract_strided_slice %12 {offsets = [2, 10], sizes = [16, 5], strides = [1, 1]} : vector<18x15xf32> to vector<16x5xf32>
    %17 = arith.addf %15, %16 : vector<16x5xf32>
    %18 = vector.shape_cast %17 : vector<16x5xf32> to vector<2x8x5xf32>
    %19 = tpu.iota {dimensions = array<i32: 1>} : vector<2x8x5xi32>
    %c6_i32 = arith.constant 6 : i32
    %20 = vector.broadcast %c6_i32 : i32 to vector<2x8x5xi32>
    %21 = arith.cmpi slt, %19, %20 : vector<2x8x5xi32>
    %cst_8 = arith.constant -1.000000e+30 : f32
    %22 = vector.broadcast %cst_8 : f32 to vector<2x8x5xf32>
    %23 = arith.select %21, %18, %22 : vector<2x8x5xi1>, vector<2x8x5xf32>
    %24 = vector.extract_strided_slice %9 {offsets = [0, 0], sizes = [1, 5], strides = [1, 1]} : vector<8x15xf32> to vector<1x5xf32>
    %cst_9 = arith.constant dense<0xFF800000> : vector<2x5xf32>
    %25 = vector.multi_reduction <maximumf>, %23, %cst_9 [1] : vector<2x8x5xf32> to vector<2x5xf32>
    %26 = vector.broadcast %24 : vector<1x5xf32> to vector<2x5xf32>
    %27 = arith.addf %25, %26 : vector<2x5xf32>
    %28 = vector.extract_strided_slice %9 {offsets = [1, 0], sizes = [1, 5], strides = [1, 1]} : vector<8x15xf32> to vector<1x5xf32>
    %29 = vector.extract_strided_slice %9 {offsets = [2, 0], sizes = [1, 1], strides = [1, 1]} : vector<8x15xf32> to vector<1x1xf32>
    %30 = vector.broadcast %28 : vector<1x5xf32> to vector<2x5xf32>
    %31 = arith.mulf %27, %30 : vector<2x5xf32>
    %cst_10 = arith.constant dense<0.000000e+00> : vector<2xf32>
    %32 = vector.multi_reduction <add>, %31, %cst_10 [1] : vector<2x5xf32> to vector<2xf32>
    %33 = vector.shape_cast %32 : vector<2xf32> to vector<2x1xf32>
    %34 = vector.broadcast %29 : vector<1x1xf32> to vector<2x1xf32>
    %35 = arith.addf %33, %34 : vector<2x1xf32>
    %36 = vector.extract_strided_slice %9 {offsets = [3, 0], sizes = [2, 1], strides = [1, 1]} : vector<8x15xf32> to vector<2x1xf32>
    %cst_11 = arith.constant 0.000000e+00 : f32
    %37 = vector.broadcast %cst_11 : f32 to vector<2x1xf32>
    %38 = arith.maximumf %35, %37 : vector<2x1xf32>
    %39 = arith.mulf %35, %36 : vector<2x1xf32>
    %40 = arith.subf %38, %39 : vector<2x1xf32>
    %41 = math.absf %35 : vector<2x1xf32>
    %cst_12 = arith.constant 0.000000e+00 : f32
    %42 = vector.broadcast %cst_12 : f32 to vector<2x1xf32>
    %43 = arith.subf %42, %41 : vector<2x1xf32>
    %44 = math.exp %43 : vector<2x1xf32>
    %cst_13 = arith.constant 1.000000e+00 : f32
    %45 = vector.broadcast %cst_13 : f32 to vector<2x1xf32>
    %46 = arith.addf %45, %44 : vector<2x1xf32>
    %47 = math.log %46 : vector<2x1xf32>
    %48 = arith.addf %40, %47 : vector<2x1xf32>
    %cst_14 = arith.constant dense<0.000000e+00> : vector<1xf32>
    %49 = vector.multi_reduction <add>, %48, %cst_14 [0] : vector<2x1xf32> to vector<1xf32>
    %50 = vector.shape_cast %49 : vector<1xf32> to vector<1x1xf32>
    %cst_15 = arith.constant 5.000000e-01 : f32
    %51 = vector.broadcast %cst_15 : f32 to vector<1x1xf32>
    %52 = arith.mulf %50, %51 : vector<1x1xf32>
    %cst_16 = arith.constant 0.000000e+00 : f32
    %53 = vector.broadcast %cst_16 : f32 to vector<5x1xf32>
    %54 = tpu.concatenate %35, %52, %53 in 0 : vector<2x1xf32>, vector<1x1xf32>, vector<5x1xf32> -> vector<8x1xf32>
    %55 = vector.shape_cast %54 : vector<8x1xf32> to vector<8x1xf32>
    %56 = vector.broadcast %55 : vector<8x1xf32> to vector<8x128xf32>
    %c0_17 = arith.constant 0 : index
    %c0_18 = arith.constant 0 : index
    %57 = vector.load %arg3[%c0_17, %c0_18] : memref<8x128xf32, #tpu.memory_space<vmem>>, vector<8x128xf32>
    tpu.vector_store %arg3[%c0_17, %c0_18], %56 {strides = array<i32>} : memref<8x128xf32, #tpu.memory_space<vmem>>, vector<8x128xf32>,
    return
  }
}

</mosaic_0001>

<bundles_post_ra>
// kernel: cnn_forward.1
= control target key start
LH: loop header
LB: loop body
LE: loop exit
PB: predicated region body
PF: predicated region fallthrough
CT: control target
= control target key end

     0   :  { %v383_v0 = vmov 0   ;;  %v16_v15 = vlaneseq  ;;  %vm34_vm0 = vcmask 261120   ;;  %v384_v18 = vmov 0.0   ;;  %s385_s30 = smov 118   ;;  %s386_s4 = smov 123   ;;  %s443_s0 = inlined_call_operand.vmem [shape: s32[16,1], index: 0, kind: input, shape index: {}]   ;;  %s444_s1 = inlined_call_operand.vmem [shape: f32[32,32], index: 1, kind: input, shape index: {}]   ;;  %s445_s2 = inlined_call_operand.vmem [shape: f32[40,15], index: 2, kind: input, shape index: {}]   ;;  %s446_s3 = inlined_call_operand.vmem [shape: f32[8,128], index: 3, kind: output, shape index: {}]  }
   0x1   :  { %377 = vset.pattern.permute.xlu0 %v383_v0  ;;  %v14_v1 = vld [vmem:[%s443_s0] sm:$0xff]  ;;  %378 = vset.pattern.permute.xlu1 %v383_v0  ;;  %v31_v3 = vld [vmem:[%s444_s1 + $0x8] sm:$0xff]  ;;  %v32_v4 = vld [vmem:[%s444_s1 + $0x10] sm:$0xff]  ;;  %v223_v24 = vrot.slane %v384_v18, 2  ;;  %v209_v25 = vrot.slane %v384_v18, 1  ;;  %vm219_vm3 = vcmask 1045504  }
   0x2   :  { %v30_v2 = vld [vmem:[%s444_s1] sm:$0xff]  ;;  %19 = vperm.xlu0 %377, %v14_v1   ;;  %v33_v5 = vld [vmem:[%s444_s1 + $0x18] sm:$0xff]  ;;  %v15_v6 = vld [vmem:[%s443_s0 + $0x8] sm:$0xff]  ;;  %v17_v16 = vand.u32 127, %v16_v15  ;;  %vm205_vm4 = vcmask 1046528   ;;  %v234_v36 = vshrl.u32 %v16_v15, 7 }
   0x3   :  { %v357_v7 = vpack.c.bf16 %v31_v3, %v30_v2  ;;  %v361_v8 = vpack.c.bf16 %v33_v5, %v32_v4  ;;  %v116_v9 = vld [vmem:[%s445_s2] sm:$0xff]  ;;  %v117_v10 = vld [vmem:[%s445_s2 + $0x8] sm:$0xff]  ;;  %v118_v11 = vld [vmem:[%s445_s2 + $0x10] sm:$0xff]  ;;  %vm238_vm6 = vcmask 39936   ;;  %vm268_vm7 = vcmask 1041409  }
   0x4   :  { %v365_v12 = vpack.c.bf16 %v117_v10, %v116_v9  ;;  %v119_v13 = vld [vmem:[%s445_s2 + $0x18] sm:$0xff]  ;;  %v277_v37 = vsub.s32 2, %v234_v36  ;;  %v120_v38 = vld [vmem:[%s445_s2 + $0x20] sm:$0xff]  ;;  %vm235_vm5 = vcmp.lt.s32.totalorder %v234_v36, 6  ;;  %v255_v54 = vsub.s32 0, %v234_v36 }
   0x5   :  { %358 = vmatprep.subr.bf16.mxu0 %v357_v7  ;;  %v369_v14 = vpack.c.bf16 %v119_v13, %v118_v11  ;;  %v261_v58 = vsub.s32 1, %v234_v36  ;;  %vm271_vm8 = vcmask 33792   ;;  %v282_v11 = vrot.slane %v120_v38, 3 }
   0x6   :  { %22 = vperm.xlu0 %377, %v15_v6   ;;  %360 = vmatpush3.bf16.msra.mxu0 %v357_v7  ;;  %v278_v39 = vrot.slane %v120_v38, %v277_v37  ;;  %v256_v61 = vrot.slane %v120_v38, %v255_v54  ;;  %vm294_vm9 = vcmask 1024   ;;  %vm303_vm10 = vcmask 1041408  }
   0x7   :  { %362 = vmatprep.subr.bf16.mxu0 %v361_v8  ;;  %366 = vmatprep.subr.bf16.mxu1 %v365_v12  ;;  %v262_v0 = vrot.slane %v120_v38, %v261_v58  ;;  %vm305_vm11 = vcmask 1042432  }
   0x8   :  { %368 = vmatpush3.bf16.msra.mxu1 %v365_v12 }
   0x9   :  { %370 = vmatprep.subr.bf16.mxu1 %v369_v14 }
   0xa   :  { %364 = vmatpush3.bf16.msra.mxu0 %v361_v8 }
   0xc   :  { %372 = vmatpush3.bf16.msra.mxu1 %v369_v14 }
  0x81   :  { %v20_v17 = vpop.permute.xlu0 %19 }
  0x82   :  { %vm24_vm1 = vcmp.eq.s32.totalorder %v20_v17, %v17_v16 }
  0x83   :  { %v317_v19 = vsel %vm24_vm1, 1.0, %v384_v18 }
  0x84   :  { %343 = vmatprep.mubr.msk.f32.mxu0 %vm34_vm0, %v317_v19 }
  0x85   :  { %v23_v20 = vpop.permute.xlu0 %22 }
  0x86   :  { %vm25_vm2 = vcmp.eq.s32.totalorder %v23_v20, %v17_v16 }
  0x87   :  { %v318_v21 = vsel %vm25_vm2, 1.0, %v384_v18 }
  0x88   :  { %344 = vmatmul.mubr.msk.f32.vlgmr.msra.gmra.mrb[0].mxu0 %vm34_vm0, %v318_v21 }
 0x15b   :  { %v345_v22 = vpop.f32.mrb[0].mxu0 }
 0x15c   :  { %v107_v23 = vpop.f32.mrb[1].mxu0 }
 0x15d   :  { %354 = vmatprep.mubr.msk.f32.mxu1 %vm34_vm0, %v107_v23 }
 0x15e   :  { %355 = vmatmul.mubr.msk.f32.vlgmr.msra.gmra.mrb[0].mxu1 %vm34_vm0, %v345_v22 }
 0x231   :  { %v356_v26 = vpop.f32.mrb[0].mxu1 }
 0x232   :  { %v207_v27 = vrot.slane %v356_v26, 1  ;;  %v221_v28 = vrot.slane %v356_v26, 2  ;;  %v193_v29 = vpop.f32.mrb[1].mxu1 }
 0x233   :  { %v206_v30 = vrot.slane %v193_v29, 1  ;;  %v220_v31 = vrot.slane %v193_v29, 2 }
 0x234   :  { %v224_v32 = vsel %vm219_vm3, %v221_v28, %v223_v24  ;;  %v210_v33 = vsel %vm205_vm4, %v207_v27, %v209_v25 }
 0x235   :  { %227 = vrot.lane.b32.xlu0 %v224_v32, %s385_s30  ;;  %213 = vrot.lane.b32.xlu1 %v210_v33, %s386_s4  ;;  %v208_v34 = vsel %vm205_vm4, %v206_v30, %v207_v27  ;;  %v222_v35 = vsel %vm219_vm3, %v220_v31, %v221_v28 }
 0x239   :  { %211 = vrot.lane.b32.xlu1 %v208_v34, %s386_s4 }
 0x23d   :  { %225 = vrot.lane.b32.xlu1 %v222_v35, %s385_s30 }
 0x2a7   :  { %v214_v40 = vpop.permute.xlu1 %213  ;;  %v228_v42 = vpop.permute.xlu0 %227 }
 0x2a8   :  { %v218_v41 = vadd.f32 %v356_v26, %v214_v40 }
 0x2aa   :  { %v232_v43 = vadd.f32 %v228_v42, %v218_v41 }
 0x2ab   :  { %v212_v44 = vpop.permute.xlu1 %211 }
 0x2ac   :  { %v237_v45 = vsel %vm235_vm5, %v232_v43, -1e+30  ;;  %v217_v47 = vadd.f32 %v212_v44, %v193_v29 }
 0x2ad   :  { %v246_v46 = vsel %vm238_vm6, %v237_v45, -inf }
 0x2ae   :  { %v247_v48 = vrot.slane %v246_v46, 4 }
 0x2af   :  { %v226_v49 = vpop.permute.xlu1 %225 }
 0x2b0   :  { %v248_v50 = vmax.f32 %v246_v46, %v247_v48  ;;  %v231_v51 = vadd.f32 %v226_v49, %v217_v47 }
 0x2b2   :  { %v249_v52 = vrot.slane %v248_v50, 2  ;;  %v236_v53 = vsel %vm235_vm5, %v231_v51, -1e+30 }
 0x2b3   :  { %v239_v55 = vsel %vm238_vm6, %v236_v53, -inf }
 0x2b4   :  { %v250_v56 = vmax.f32 %v248_v50, %v249_v52  ;;  %v240_v57 = vrot.slane %v239_v55, 4 }
 0x2b6   :  { %v251_v59 = vrot.slane %v250_v56, 1  ;;  %v241_v60 = vmax.f32 %v239_v55, %v240_v57 }
 0x2b8   :  { %v242_v62 = vrot.slane %v241_v60, 2  ;;  %v252_v63 = vmax.f32 %v250_v56, %v251_v59 }
 0x2ba   :  { %v243_v1 = vmax.f32 %v241_v60, %v242_v62  ;;  %v258_v2 = vadd.f32 %v256_v61, %v252_v63 }
 0x2bc   :  { %v244_v3 = vrot.slane %v243_v1, 1  ;;  %v264_v4 = vmul.f32 %v262_v0, %v258_v2 }
 0x2be   :  { %v245_v5 = vmax.f32 %v243_v1, %v244_v3  ;;  %v267_v8 = vrot.slane %v264_v4, 7 }
 0x2c0   :  { %v257_v6 = vadd.f32 %v256_v61, %v245_v5 }
 0x2c2   :  { %v263_v7 = vmul.f32 %v262_v0, %v257_v6 }
 0x2c4   :  { %v269_v9 = vsel %vm268_vm7, %v267_v8, %v263_v7 }
 0x2c5   :  { %v272_v10 = vsel %vm271_vm8, %v269_v9, 0.0 }
 0x2c6   :  { %273 = vadd.xlane.f32.xlu0 %v272_v10 }
 0x353   :  { %v274_v12 = vpop.xlane.xlu0 %273 }
 0x354   :  { %v279_v13 = vadd.f32 %v278_v39, %v274_v12 }
 0x356   :  { %v280_v14 = vmax.f32 %v279_v13, 0.0  ;;  %v284_v15 = vmul.f32 %v282_v11, %v279_v13  ;;  %v286_v16 = vand.u32 2147483647, %v279_v13 }
 0x358   :  { %v285_v17 = vsub.f32 %v280_v14, %v284_v15  ;;  %v287_v18 = vsub.f32 0.0, %v286_v16 }
 0x35a   :  { %v288_v19 = vmul.f32 1.442695, %v287_v18 }
 0x35c   :  { %379 = vpow2.f32 %v288_v19 }
 0x366   :  { %v380_v20 = vpop.eup %379 }
 0x367   :  { %v290_v21 = vadd.f32 1.0, %v380_v20 }
 0x369   :  { %381 = vlog2.f32 %v290_v21 }
 0x373   :  { %v382_v22 = vpop.eup %381 }
 0x374   :  { %v292_v23 = vmul.f32 0.6931472, %v382_v22 }
 0x376   :  { %v293_v24 = vadd.f32 %v292_v23, %v285_v17 }
 0x378   :  { %v295_v25 = vsel %vm294_vm9, %v293_v24, 0.0 }
 0x379   :  { %v296_v26 = vrot.slane %v295_v25, 4 }
 0x37b   :  { %v297_v27 = vadd.f32 %v296_v26, %v295_v25 }
 0x37d   :  { %v298_v28 = vrot.slane %v297_v27, 2 }
 0x37f   :  { %v299_v29 = vadd.f32 %v298_v28, %v297_v27 }
 0x381   :  { %v300_v30 = vrot.slane %v299_v29, 1 }
 0x383   :  { %v301_v31 = vadd.f32 %v300_v30, %v299_v29 }
 0x385   :  { %v302_v32 = vmul.f32 0.5, %v301_v31 }
 0x387   :  { %v304_v33 = vsel %vm303_vm10, %v279_v13, %v302_v32 }
 0x388   :  { %v306_v34 = vsel %vm305_vm11, %v304_v33, 0.0 }
 0x389   :  { %309 = vperm.xlu1 %378, %v306_v34  }
 0x408   :  { %v310_v35 = vpop.permute.xlu1 %309 }
 0x409   :  { %312 = vst [vmem:[%s446_s3] sm:$0xff] %v310_v35 }

</bundles_post_ra>
